<compile_context>
chip_gen: v7x
topology: tpu7x:2x2x1
jax: 0.10.0
libtpu: 0.0.40
codegen_flags: <defaults>
</compile_context>

<pallas_src>
import math

import jax
import jax.numpy as jnp
from jax import lax
from jax.experimental import pallas as pl
from jax.experimental.pallas import tpu as pltpu


def encoder_kernel(x_ref, w1_ref, b1_ref, w2_ref, b2_ref, o_ref):
    # h = x @ W1^T + b1 ; out = h @ W2^T + b2   (weights kept in PyTorch (out, in) layout)
    x = x_ref[...]
    h = lax.dot_general(
        x, w1_ref[...],
        dimension_numbers=(((1,), (1,)), ((), ())),   # contract x dim1 with W1 dim1
        preferred_element_type=jnp.float32,
    )
    h = (h + b1_ref[...].astype(jnp.float32)).astype(w2_ref.dtype)
    out = lax.dot_general(
        h, w2_ref[...],
        dimension_numbers=(((1,), (1,)), ((), ())),
        preferred_element_type=jnp.float32,
    )
    out = out + b2_ref[...].astype(jnp.float32)
    o_ref[...] = out.astype(o_ref.dtype)


def encoder_forward(x, w1, b1, w2, b2, *, block_m=256):
    """x: (B, in_features); w1: (hidden, in_features); w2: (hidden, hidden);
    b1, b2: (hidden,). Weights stay in PyTorch (out, in) layout — no per-call transpose."""
    B, in_f = x.shape
    hidden = w1.shape[0]

    # Batch tile: full batch if small, else a multiple-of-8 tile (>=256 amortizes the
    # ~0.35us per-step overhead and keeps the 256x256 MXU fed in M).
    tm = B if B <= block_m else block_m
    grid = (pl.cdiv(B, tm),)

    b1r = b1.reshape(1, hidden)
    b2r = b2.reshape(1, hidden)

    itemsize = jnp.dtype(x.dtype).itemsize
    resident_bytes = (w1.size + w2.size + 2 * hidden) * itemsize
    stream_bytes = 2 * 2 * (tm * in_f + tm * hidden) * itemsize   # double-buffered x/out
    scratch_bytes = 2 * tm * hidden * 4                           # f32 intermediates
    vmem_limit = int(min(max(resident_bytes + stream_bytes + scratch_bytes + (4 << 20),
                             16 << 20), 64 << 20))

    flops = 2 * B * hidden * (in_f + hidden)
    bytes_accessed = ((x.size + w1.size + w2.size + 2 * hidden) + B * hidden) * itemsize

    return pl.pallas_call(
        encoder_kernel,
        out_shape=jax.ShapeDtypeStruct((B, hidden), x.dtype),
        grid=grid,
        in_specs=[
            pl.BlockSpec((tm, in_f), lambda i: (i, 0)),        # x: streamed per batch tile
            pl.BlockSpec((hidden, in_f), lambda i: (0, 0)),    # w1: VMEM-resident
            pl.BlockSpec((1, hidden), lambda i: (0, 0)),       # b1: VMEM-resident
            pl.BlockSpec((hidden, hidden), lambda i: (0, 0)),  # w2: VMEM-resident
            pl.BlockSpec((1, hidden), lambda i: (0, 0)),       # b2: VMEM-resident
        ],
        out_specs=pl.BlockSpec((tm, hidden), lambda i: (i, 0)),
        compiler_params=pltpu.CompilerParams(
            dimension_semantics=("parallel",),
            vmem_limit_bytes=vmem_limit,
        ),
        cost_estimate=pl.CostEstimate(
            flops=flops, transcendentals=0, bytes_accessed=bytes_accessed),
    )(x, w1, b1r, w2, b2r)


def init_encoder_params(key, in_features, hidden_dim, dtype=jnp.float32):
    """kaiming_normal_ (fan_in, gain=sqrt(2)) weights, zero biases, matching the
    PyTorch init_weights(m) in the reference module."""
    k1, k2 = jax.random.split(key)
    std1 = math.sqrt(2.0 / in_features)
    std2 = math.sqrt(2.0 / hidden_dim)
    w1 = (jax.random.normal(k1, (hidden_dim, in_features), jnp.float32) * std1).astype(dtype)
    b1 = jnp.zeros((hidden_dim,), dtype)
    w2 = (jax.random.normal(k2, (hidden_dim, hidden_dim), jnp.float32) * std2).astype(dtype)
    b2 = jnp.zeros((hidden_dim,), dtype)
    return w1, b1, w2, b2


if __name__ == "__main__":
    key = jax.random.PRNGKey(0)
    kx, kp = jax.random.split(key)

    batch = 8
    in_features = 32
    hidden_dim = 128

    x = jax.random.normal(kx, (batch, in_features), jnp.float32)
    w1, b1, w2, b2 = init_encoder_params(kp, in_features, hidden_dim)

    out = encoder_forward(x, w1, b1, w2, b2)
    out = jax.block_until_ready(out)

    # Reference check in plain JAX (same math as the PyTorch forward).
    ref = (x @ w1.T + b1) @ w2.T + b2
    assert out.shape == (batch, hidden_dim)
    assert jnp.allclose(out, ref, atol=1e-4, rtol=1e-4)

    print("KERNEL_OK")
</pallas_src>

<mosaic_0001>
module attributes {stable_mosaic.version = 11 : i64} {
  func.func @encoder_kernel(%arg0: i32, %arg1: memref<8x32xf32, #tpu.memory_space<vmem>>, %arg2: memref<128x32xf32, #tpu.memory_space<vmem>>, %arg3: memref<1x128xf32, #tpu.memory_space<vmem>>, %arg4: memref<128x128xf32, #tpu.memory_space<vmem>>, %arg5: memref<1x128xf32, #tpu.memory_space<vmem>>, %arg6: memref<8x128xf32, #tpu.memory_space<vmem>>) attributes {dimension_semantics = [#tpu.dimension_semantics<parallel>], iteration_bounds = array<i64: 1>, scalar_prefetch = 0 : i64, scratch_operands = 0 : i64, tpu.core_type = #tpu.core_type<tc>, window_params = [{transform_indices = @transform_0, window_bounds = array<i64: 8, 32>}, {pipeline_mode = #tpu.pipeline_mode<synchronous>, transform_indices = @transform_1, window_bounds = array<i64: 128, 32>}, {pipeline_mode = #tpu.pipeline_mode<synchronous>, transform_indices = @transform_2, window_bounds = array<i64: 1, 128>}, {pipeline_mode = #tpu.pipeline_mode<synchronous>, transform_indices = @transform_3, window_bounds = array<i64: 128, 128>}, {pipeline_mode = #tpu.pipeline_mode<synchronous>, transform_indices = @transform_4, window_bounds = array<i64: 1, 128>}, {transform_indices = @transform_5, window_bounds = array<i64: 8, 128>}]} {
    %c0 = arith.constant 0 : index
    %c0_0 = arith.constant 0 : index
    %0 = vector.load %arg1[%c0, %c0_0] : memref<8x32xf32, #tpu.memory_space<vmem>>, vector<8x32xf32>
    %c0_1 = arith.constant 0 : index
    %c0_2 = arith.constant 0 : index
    %1 = vector.load %arg2[%c0_1, %c0_2] : memref<128x32xf32, #tpu.memory_space<vmem>>, vector<128x32xf32>
    %cst = arith.constant dense<0.000000e+00> : vector<8x128xf32>
    %2 = tpu.matmul %0, %1, %cst {dimension_numbers = #tpu.dot_dimension_numbers<[1], [1], [0], [0], [0, 0, 1, 0], [], []>} : vector<8x32xf32>, vector<128x32xf32>, vector<8x128xf32> -> vector<8x128xf32>
    %c0_3 = arith.constant 0 : index
    %c0_4 = arith.constant 0 : index
    %3 = vector.load %arg3[%c0_3, %c0_4] : memref<1x128xf32, #tpu.memory_space<vmem>>, vector<1x128xf32>
    %4 = vector.broadcast %3 : vector<1x128xf32> to vector<8x128xf32>
    %5 = arith.addf %2, %4 : vector<8x128xf32>
    %c0_5 = arith.constant 0 : index
    %c0_6 = arith.constant 0 : index
    %6 = vector.load %arg4[%c0_5, %c0_6] : memref<128x128xf32, #tpu.memory_space<vmem>>, vector<128x128xf32>
    %cst_7 = arith.constant dense<0.000000e+00> : vector<8x128xf32>
    %7 = tpu.matmul %5, %6, %cst_7 {dimension_numbers = #tpu.dot_dimension_numbers<[1], [1], [0], [0], [0, 0, 1, 0], [], []>} : vector<8x128xf32>, vector<128x128xf32>, vector<8x128xf32> -> vector<8x128xf32>
    %c0_8 = arith.constant 0 : index
    %c0_9 = arith.constant 0 : index
    %8 = vector.load %arg5[%c0_8, %c0_9] : memref<1x128xf32, #tpu.memory_space<vmem>>, vector<1x128xf32>
    %9 = vector.broadcast %8 : vector<1x128xf32> to vector<8x128xf32>
    %10 = arith.addf %7, %9 : vector<8x128xf32>
    %c0_10 = arith.constant 0 : index
    %c0_11 = arith.constant 0 : index
    %11 = vector.load %arg6[%c0_10, %c0_11] : memref<8x128xf32, #tpu.memory_space<vmem>>, vector<8x128xf32>
    tpu.vector_store %arg6[%c0_10, %c0_11], %10 {strides = array<i32>} : memref<8x128xf32, #tpu.memory_space<vmem>>, vector<8x128xf32>,
    return
  }
  func.func @transform_0(%arg0: i32) -> (i32, i32) {
    %c0_i32 = arith.constant 0 : i32
    %c0_i32_0 = arith.constant 0 : i32
    return %arg0, %c0_i32 : i32, i32
  }
  func.func @transform_1(%arg0: i32) -> (i32, i32) {
    %c0_i32 = arith.constant 0 : i32
    %c0_i32_0 = arith.constant 0 : i32
    %c0_i32_1 = arith.constant 0 : i32
    return %c0_i32, %c0_i32_0 : i32, i32
  }
  func.func @transform_2(%arg0: i32) -> (i32, i32) {
    %c0_i32 = arith.constant 0 : i32
    %c0_i32_0 = arith.constant 0 : i32
    %c0_i32_1 = arith.constant 0 : i32
    return %c0_i32, %c0_i32_0 : i32, i32
  }
  func.func @transform_3(%arg0: i32) -> (i32, i32) {
    %c0_i32 = arith.constant 0 : i32
    %c0_i32_0 = arith.constant 0 : i32
    %c0_i32_1 = arith.constant 0 : i32
    return %c0_i32, %c0_i32_0 : i32, i32
  }
  func.func @transform_4(%arg0: i32) -> (i32, i32) {
    %c0_i32 = arith.constant 0 : i32
    %c0_i32_0 = arith.constant 0 : i32
    %c0_i32_1 = arith.constant 0 : i32
    return %c0_i32, %c0_i32_0 : i32, i32
  }
  func.func @transform_5(%arg0: i32) -> (i32, i32) {
    %c0_i32 = arith.constant 0 : i32
    %c0_i32_0 = arith.constant 0 : i32
    return %arg0, %c0_i32 : i32, i32
  }
}

</mosaic_0001>

<bundles_post_ra>
// kernel: tpu_custom_call.1
= control target key start
LH: loop header
LB: loop body
LE: loop exit
PB: predicated region body
PF: predicated region fallthrough
CT: control target
= control target key end

     0   :  { %vm45_vm0 = vcmask 261120   ;;  %v482_v2 = vmov 0.0|0.0   ;;  %vm483_vm2 = vmmov 0   ;;  %v484_v5 = vmov 0.0   ;;  %s672_s0 = inlined_call_operand.vmem [shape: f32[8,32], index: 0, kind: input, shape index: {}]   ;;  %s673_s1 = inlined_call_operand.vmem [shape: f32[128,32], index: 1, kind: input, shape index: {}]   ;;  %s674_s2 = inlined_call_operand.vmem [shape: f32[1,128], index: 2, kind: input, shape index: {}]   ;;  %s675_s3 = inlined_call_operand.vmem [shape: f32[128,128], index: 3, kind: input, shape index: {}]   ;;  %s676_s4 = inlined_call_operand.vmem [shape: f32[1,128], index: 4, kind: input, shape index: {}]   ;;  %s677_s5 = inlined_call_operand.hbm [shape: f32[8,128], index: 5, kind: output, shape index: {}]  }
   0x1   :  { %v22_v0 = vld [vmem:[%s673_s1] sm:$0xff]  ;;  %v23_v1 = vld [vmem:[%s673_s1 + $0x8] sm:$0xff]  ;;  %398 = vmatprep.subr.bf16.mxu0 %v482_v2  ;;  %vm525_vm1 = vmpackc.low %vm45_vm0, %vm45_vm0  ;;  %430 = vmatprep.subr.bf16.mxu1 %v482_v2 }
   0x2   :  { %v399_v3 = vpack.c.bf16 %v23_v1, %v22_v0  ;;  %360 = vmatprep.mubr.msk.f32.mxu0 %vm483_vm2, %v484_v5  ;;  %395 = vmatprep.mubr.msk.f32.mxu1 %vm483_vm2, %v484_v5  ;;  %v24_v6 = vld [vmem:[%s673_s1 + $0x10] sm:$0xff]  ;;  %v25_v7 = vld [vmem:[%s673_s1 + $0x18] sm:$0xff]  ;;  %v167_v8 = vld [vmem:[%s675_s3] sm:$0xff] }
   0x3   :  { %v168_v9 = vld [vmem:[%s675_s3 + $0x8] sm:$0xff]  ;;  %v403_v10 = vpack.c.bf16 %v25_v7, %v24_v6  ;;  %v169_v12 = vld [vmem:[%s675_s3 + $0x10] sm:$0xff]  ;;  %v170_v13 = vld [vmem:[%s675_s3 + $0x18] sm:$0xff] }
   0x4   :  { %401 = vmatpush3.bf16.xpose.msk.msra.mxu0 %vm525_vm1, %v399_v3  ;;  %v431_v11 = vpack.c.bf16 %v168_v9, %v167_v8 }
   0x5   :  { %402 = vmatprep.subr.bf16.mxu0 %v482_v2 }
   0x6   :  { %432 = vmatpush3.bf16.xpose.msra.mxu1 %v431_v11 }
   0x7   :  { %433 = vmatprep.subr.bf16.mxu1 %v482_v2 }
   0xc   :  { %405 = vmatpush3.bf16.xpose.msk.msra.mxu0 %vm525_vm1, %v403_v10 }
   0xd   :  { %10 = vsyncpa [#allocation3], 0  ;;  %406 = vmatprep.subr.bf16.mxu0 %v482_v2  ;;  %v26_v14 = vld [vmem:[%s673_s1 + $0x20] sm:$0xff]  ;;  %v27_v15 = vld [vmem:[%s673_s1 + $0x28] sm:$0xff]  ;;  %v434_v16 = vpack.c.bf16 %v170_v13, %v169_v12  ;;  %s485_s11 = smov [#allocation2]  }
   0xe   :  { %v407_v17 = vpack.c.bf16 %v27_v15, %v26_v14  ;;  %v171_v18 = vld [vmem:[%s675_s3 + $0x20] sm:$0xff]  ;;  %v172_v19 = vld [vmem:[%s675_s3 + $0x28] sm:$0xff]  ;;  %v28_v20 = vld [vmem:[%s673_s1 + $0x30] sm:$0xff]  ;;  %s267_s12 = sshll.u32 %s485_s11, 4  ;;  %s268_s12 = int_to_ptr.vmem [resolvable:$true] %s267_s12 }
   0xf   :  { %435 = vmatpush3.bf16.xpose.msra.mxu1 %v434_v16  ;;  %v29_v21 = vld [vmem:[%s673_s1 + $0x38] sm:$0xff]  ;;  %v437_v22 = vpack.c.bf16 %v172_v19, %v171_v18  ;;  %v173_v24 = vld [vmem:[%s675_s3 + $0x30] sm:$0xff]  ;;  %v30_v26 = vld [vmem:[%s673_s1 + $0x40] sm:$0xff]  ;;  %p463_p1 = scmp.lt.s32.totalorder %s268_s12, %s268_s12 }
  0x10   :  { %436 = vmatprep.subr.bf16.mxu1 %v482_v2  ;;  %v411_v23 = vpack.c.bf16 %v29_v21, %v28_v20  ;;  %v174_v25 = vld [vmem:[%s675_s3 + $0x38] sm:$0xff]  ;;  %v31_v27 = vld [vmem:[%s673_s1 + $0x48] sm:$0xff]  ;;  %v175_v30 = vld [vmem:[%s675_s3 + $0x40] sm:$0xff] }
  0x11   :  { %v440_v28 = vpack.c.bf16 %v174_v25, %v173_v24  ;;  %v415_v29 = vpack.c.bf16 %v31_v27, %v30_v26  ;;  %v176_v31 = vld [vmem:[%s675_s3 + $0x48] sm:$0xff]  ;;  %v32_v32 = vld [vmem:[%s673_s1 + $0x50] sm:$0xff]  ;;  %v33_v33 = vld [vmem:[%s673_s1 + $0x58] sm:$0xff] }
  0x12   :  { %v443_v34 = vpack.c.bf16 %v176_v31, %v175_v30  ;;  %v419_v35 = vpack.c.bf16 %v33_v33, %v32_v32  ;;  %v177_v36 = vld [vmem:[%s675_s3 + $0x50] sm:$0xff]  ;;  %v178_v37 = vld [vmem:[%s675_s3 + $0x58] sm:$0xff]  ;;  %v34_v38 = vld [vmem:[%s673_s1 + $0x60] sm:$0xff] }
  0x13   :  { %v35_v39 = vld [vmem:[%s673_s1 + $0x68] sm:$0xff]  ;;  %v446_v40 = vpack.c.bf16 %v178_v37, %v177_v36  ;;  %v179_v42 = vld [vmem:[%s675_s3 + $0x60] sm:$0xff]  ;;  %v36_v44 = vld [vmem:[%s673_s1 + $0x70] sm:$0xff] }
  0x14   :  { %409 = vmatpush3.bf16.xpose.msk.msra.mxu0 %vm525_vm1, %v407_v17  ;;  %v423_v41 = vpack.c.bf16 %v35_v39, %v34_v38  ;;  %v180_v43 = vld [vmem:[%s675_s3 + $0x68] sm:$0xff]  ;;  %v37_v45 = vld [vmem:[%s673_s1 + $0x78] sm:$0xff]  ;;  %v181_v48 = vld [vmem:[%s675_s3 + $0x70] sm:$0xff] }
  0x15   :  { %410 = vmatprep.subr.bf16.mxu0 %v482_v2  ;;  %v449_v46 = vpack.c.bf16 %v180_v43, %v179_v42  ;;  %v427_v47 = vpack.c.bf16 %v37_v45, %v36_v44  ;;  %v182_v49 = vld [vmem:[%s675_s3 + $0x78] sm:$0xff]  ;;  %v21_v51 = vld [vmem:[%s672_s0] sm:$0xff]  ;;  %s458_s0 = scalar_lea.vmem %s268_s12, 128 }
  0x16   :  { %v452_v50 = vpack.c.bf16 %v182_v49, %v181_v48  ;;  %v275_v52 = vld [vmem:[%s674_s2] ss:$0 sm:$0xff]  ;;  %p459_p0 = scmp.ne.s32.totalorder %s268_s12, %s458_s0  ;;  %p464_p2 = scmp.lt.s32.totalorder %s458_s0, %s458_s0 }
  0x17   :  { %438 = vmatpush3.bf16.xpose.msra.mxu1 %v437_v22  ;;  %v293_v56 = vld [vmem:[%s676_s4] ss:$0 sm:$0xff] }
  0x18   :  { %439 = vmatprep.subr.bf16.mxu1 %v482_v2  ;;  %p465_p3 = por %p464_p2, %p463_p1 }
  0x1a   :  { %p466_p4 = pnand %p465_p3, %p459_p0 }
  0x1c   :  { %413 = vmatpush3.bf16.xpose.msk.msra.mxu0 %vm525_vm1, %v411_v23 }
  0x1d   :  { %414 = vmatprep.subr.bf16.mxu0 %v482_v2 }
  0x1f   :  { %441 = vmatpush3.bf16.xpose.msra.mxu1 %v440_v28 }
  0x20   :  { %442 = vmatprep.subr.bf16.mxu1 %v482_v2 }
  0x24   :  { %417 = vmatpush3.bf16.xpose.msk.msra.mxu0 %vm525_vm1, %v415_v29 }
  0x25   :  { %418 = vmatprep.subr.bf16.mxu0 %v482_v2 }
  0x27   :  { %444 = vmatpush3.bf16.xpose.msra.mxu1 %v443_v34 }
  0x28   :  { %445 = vmatprep.subr.bf16.mxu1 %v482_v2 }
  0x2c   :  { %421 = vmatpush3.bf16.xpose.msk.msra.mxu0 %vm525_vm1, %v419_v35 }
  0x2d   :  { %422 = vmatprep.subr.bf16.mxu0 %v482_v2 }
  0x2f   :  { %447 = vmatpush3.bf16.xpose.msra.mxu1 %v446_v40 }
  0x30   :  { %448 = vmatprep.subr.bf16.mxu1 %v482_v2 }
  0x34   :  { %425 = vmatpush3.bf16.xpose.msk.msra.mxu0 %vm525_vm1, %v423_v41 }
  0x35   :  { %426 = vmatprep.subr.bf16.mxu0 %v482_v2 }
  0x37   :  { %450 = vmatpush3.bf16.xpose.msra.mxu1 %v449_v46 }
  0x38   :  { %451 = vmatprep.subr.bf16.mxu1 %v482_v2 }
  0x3c   :  { %429 = vmatpush3.bf16.xpose.msk.msra.mxu0 %vm525_vm1, %v427_v47 }
  0x3f   :  { %453 = vmatpush3.bf16.xpose.msra.mxu1 %v452_v50 }
  0x43   :  { %361 = vmatmul.mubr.msk.f32.vlgmr.msra.gmra.mrb[0].mxu0 %vm45_vm0, %v21_v51 }
 0x116   :  { %v163_v53 = vpop.f32.mrb[0].mxu0 }
 0x117   :  { %v164_v54 = vadd.f32 %v275_v52, %v163_v53  ;;  %v362_v55 = vpop.f32.mrb[1].mxu0 }
 0x119   :  { %396 = vmatmul.mubr.f32.vlgmr.msra.gmra.mrb[0].mxu1 %v164_v54 }
 0x1ec   :  { %v256_v57 = vpop.f32.mrb[0].mxu1 }
 0x1ed   :  { %v257_v58 = vadd.f32 %v293_v56, %v256_v57  ;;  %v397_v59 = vpop.f32.mrb[1].mxu1 }
 0x1ef   :  { %260 = vst [vmem:[#allocation2] sm:$0xff] %v257_v58 }
 0x1f0   :  { %469 = shalt.err (!%p466_p4)
}
 0x1f1   :  { %s470_s14 = scalar_lea.hbm %s677_s5, 128 }
 0x1f2   :  { %p471_p5 = scmp.ne.s32.totalorder %s677_s5, %s470_s14  ;;  %p474_p6 = scmp.lt.u32.totalorder %s470_s14, %s677_s5 }
 0x1f4   :  { %p476_p7 = pnand %p474_p6, %p471_p5 }
 0x1f6   :  { %479 = shalt.err (!%p476_p7)
}
 0x1f7   :  { %270 = dma.vmem_to_hbm [thread:$0]  %s268_s12, 128, %s677_s5, [#allocation3]  }
 0x1f8   :  { %480 = dma.done.wait [#allocation3], 128  }
 0x1f9   :  { %481 = vsyncadd [#allocation3], 4294967168 }
 0x1fa   :  { %274 = vsyncpa [#allocation3], 1 }

</bundles_post_ra>
